<compile_context>
chip_gen: v7x
topology: tpu7x:2x2x1
jax: 0.10.0
libtpu: 0.0.40
codegen_flags: <defaults>
</compile_context>

<pallas_src>
import functools

import jax
import jax.numpy as jnp
from jax.experimental import pallas as pl
from jax.experimental.pallas import tpu as pltpu


def _cdiv(a, b):
    return -(-a // b)


def _round_up(a, b):
    return _cdiv(a, b) * b


def _input_spec(block_shape, index_map, buffers):
    """Input BlockSpec, multi-buffered when this JAX build supports it."""
    if buffers is not None and buffers != 2:
        try:
            return pl.BlockSpec(block_shape, index_map,
                                pipeline_mode=pl.Buffered(buffers))
        except (TypeError, AttributeError):
            pass   # older BlockSpec signature: fall back to default (2 bufs)
    return pl.BlockSpec(block_shape, index_map)


# ---------------------------------------------------------------------------
# Kernels
# ---------------------------------------------------------------------------
def _dice_kernel_lanes(x_ref, t_ref, inter_ref, denom_ref, *,
                       total_rows, block_rows, grouped):
    """Lane-major path: x/t blocks are (N, block_rows, 128)."""
    s = pl.program_id(0)                      # TensorCore split
    k = pl.program_id(1)                      # block step within the split
    steps = pl.num_programs(1)

    @pl.when(k == 0)
    def _():
        inter_ref[...] = jnp.zeros_like(inter_ref)
        denom_ref[...] = jnp.zeros_like(denom_ref)

    gb = s * steps + k                        # global block index
    valid = total_rows - gb * block_rows      # valid (·,128)-rows in block

    def accumulate(x, t):                     # x, t already f32
        if grouped:
            n, r, l = x.shape
            xg = x.reshape(n, r // 8, 8, l)   # free relabeling (vreg groups)
            tg = t.reshape(n, r // 8, 8, l)
            # Pure VALU adds across vreg groups into full-vreg partials;
            # the 8-sublane / 128-lane reduce is deferred to the epilogue.
            inter_ref[...] += jnp.sum(xg * tg, axis=1)
            denom_ref[...] += jnp.sum(xg + tg, axis=1)   # sum(x) + sum(t)
        else:                                 # tiny single-block case
            inter_ref[...] += x * t
            denom_ref[...] += x + t

    @pl.when(valid >= block_rows)             # hot path: full block, no mask
    def _():
        accumulate(x_ref[...].astype(jnp.float32),
                   t_ref[...].astype(jnp.float32))

    @pl.when(valid < block_rows)              # tail / overflow block
    def _():
        rows = jax.lax.broadcasted_iota(jnp.int32, x_ref.shape, 1)
        m = rows < valid                      # valid <= 0 masks everything
        accumulate(jnp.where(m, x_ref[...].astype(jnp.float32), 0.0),
                   jnp.where(m, t_ref[...].astype(jnp.float32), 0.0))


def _dice_kernel_flat(x_ref, t_ref, inter_ref, denom_ref, *,
                      total_cols, block_cols):
    """Fallback path for D % 128 != 0: x/t blocks are (N, block_cols)."""
    s = pl.program_id(0)
    k = pl.program_id(1)
    steps = pl.num_programs(1)

    @pl.when(k == 0)
    def _():
        inter_ref[...] = jnp.zeros_like(inter_ref)
        denom_ref[...] = jnp.zeros_like(denom_ref)

    gb = s * steps + k
    valid = total_cols - gb * block_cols      # valid lanes in this block

    def accumulate(x, t):
        inter_ref[...] += jnp.sum(x * t, axis=1, keepdims=True)
        denom_ref[...] += jnp.sum(x + t, axis=1, keepdims=True)

    @pl.when(valid >= block_cols)
    def _():
        accumulate(x_ref[...].astype(jnp.float32),
                   t_ref[...].astype(jnp.float32))

    @pl.when(valid < block_cols)
    def _():
        lanes = jax.lax.broadcasted_iota(jnp.int32, x_ref.shape, 1)
        m = lanes < valid
        accumulate(jnp.where(m, x_ref[...].astype(jnp.float32), 0.0),
                   jnp.where(m, t_ref[...].astype(jnp.float32), 0.0))


# ---------------------------------------------------------------------------
# Wrapper
# ---------------------------------------------------------------------------
@functools.partial(jax.jit, static_argnames=("block_bytes", "buffers"))
def _dice_loss_impl(inp, target, *, block_bytes, buffers):
    n = target.shape[0]
    x = inp.reshape(n, -1)           # same ordering as torch .view(N, -1)
    t = target.reshape(n, -1)        # bool/int8/bf16 stream as-is (no cast)
    d = x.shape[1]

    x_itm = jnp.dtype(x.dtype).itemsize
    t_itm = jnp.dtype(t.dtype).itemsize

    if d % 128 == 0:
        # ---- lane-major path: (N, D) -> (N, D/128, 128), zero-copy --------
        d128 = d // 128
        x_in = x.reshape(n, d128, 128)
        t_in = t.reshape(n, d128, 128)

        if d128 < 8:
            block_rows, grouped = d128, False        # single tiny block
        else:
            budget = max(8, (block_bytes // (n * 128 * x_itm)) // 8 * 8)
            block_rows = min(budget, _round_up(d128, 8))
            grouped = True
        acc_rows = 8 if grouped else d128

        nb = _cdiv(d128, block_rows)                 # total blocks
        num_splits = 2 if nb >= 2 else 1             # always split when we can
        steps = _cdiv(nb, num_splits)

        def in_map(s, k):
            # Clamp the (possible) overflow iteration of an odd block count;
            # its contribution is masked to zero inside the kernel.
            return (0, jnp.minimum(s * steps + k, nb - 1), 0)

        kernel = functools.partial(_dice_kernel_lanes, total_rows=d128,
                                   block_rows=block_rows, grouped=grouped)
        in_specs = [
            _input_spec((n, block_rows, 128), in_map, buffers),
            _input_spec((n, block_rows, 128), in_map, buffers),
        ]
        out_specs = [
            pl.BlockSpec((None, n, acc_rows, 128), lambda s, k: (s, 0, 0, 0)),
            pl.BlockSpec((None, n, acc_rows, 128), lambda s, k: (s, 0, 0, 0)),
        ]
        out_shape = (
            jax.ShapeDtypeStruct((num_splits, n, acc_rows, 128), jnp.float32),
            jax.ShapeDtypeStruct((num_splits, n, acc_rows, 128), jnp.float32),
        )
        need = buffers * n * block_rows * 128 * (x_itm + t_itm)
        args = (x_in, t_in)
    else:
        # ---- flat path: no host-side pad; lane tail masked in-kernel ------
        n_pad = _round_up(n, 8)                      # sublane-padded VMEM rows
        budget = max(128, (block_bytes // (n_pad * x_itm)) // 128 * 128)
        budget = min(budget, 64 * 1024)
        block_cols = d if d <= budget else budget    # full extent if it fits

        nb = _cdiv(d, block_cols)
        num_splits = 2 if nb >= 2 else 1
        steps = _cdiv(nb, num_splits)

        def in_map(s, k):
            return (0, jnp.minimum(s * steps + k, nb - 1))

        kernel = functools.partial(_dice_kernel_flat, total_cols=d,
                                   block_cols=block_cols)
        in_specs = [
            _input_spec((n, block_cols), in_map, buffers),
            _input_spec((n, block_cols), in_map, buffers),
        ]
        out_specs = [
            pl.BlockSpec((None, n, 1), lambda s, k: (s, 0, 0)),
            pl.BlockSpec((None, n, 1), lambda s, k: (s, 0, 0)),
        ]
        out_shape = (
            jax.ShapeDtypeStruct((num_splits, n, 1), jnp.float32),
            jax.ShapeDtypeStruct((num_splits, n, 1), jnp.float32),
        )
        need = buffers * n_pad * block_cols * (x_itm + t_itm)
        args = (x, t)

    # Explicit scoped-VMEM budget: defaults (24 MiB triple-buffered inputs
    # at 4 MiB blocks) fit under v7x's 64 MiB physical VMEM with headroom.
    vmem_limit = int(max(48 * 1024 * 1024, need + 8 * 1024 * 1024))

    inter_out, denom_out = pl.pallas_call(
        kernel,
        out_shape=out_shape,
        grid_spec=pltpu.PrefetchScalarGridSpec(
            num_scalar_prefetch=0,
            grid=(num_splits, steps),
            in_specs=in_specs,
            out_specs=out_specs,
        ),
        compiler_params=pltpu.CompilerParams(
            dimension_semantics=("parallel", "arbitrary"),
            vmem_limit_bytes=vmem_limit),
    )(*args)

    # Tiny JAX epilogue: fold splits/sublanes/lanes, then the Dice formula.
    inter = inter_out.reshape(inter_out.shape[0], n, -1).sum(axis=(0, 2))
    denom = denom_out.reshape(denom_out.shape[0], n, -1).sum(axis=(0, 2))
    smooth = jnp.float32(1.0)
    per_sample = 2.0 * (inter + smooth) / (denom + smooth)
    return jnp.float32(1.0) - per_sample.sum() / jnp.float32(n)


def dice_loss(inp, target, block_bytes=4 * 1024 * 1024, buffers=3):
    """DiceLoss.forward.  Predictions may be f32/bf16; targets may be
    f32/bf16/int8/bool — all stream into the kernel unconverted."""
    try:
        return _dice_loss_impl(inp, target, block_bytes=block_bytes,
                               buffers=buffers)
    except Exception:                      # noqa: BLE001
        if buffers == 2:
            raise
        # Fallback if this JAX/Mosaic build rejects pl.Buffered(n>2)
        # multi-buffering: use the default double-buffered pipeline.
        return _dice_loss_impl(inp, target, block_bytes=block_bytes, buffers=2)


def dice_loss_ref(inp, target):
    n = target.shape[0]
    smooth = 1.0
    xf = inp.reshape(n, -1).astype(jnp.float32)
    tf = target.reshape(n, -1).astype(jnp.float32)
    inter = (xf * tf).sum(1)
    loss = 2.0 * (inter + smooth) / (xf.sum(1) + tf.sum(1) + smooth)
    return 1.0 - loss.sum() / n


if __name__ == "__main__":
    key = jax.random.PRNGKey(0)
    ks = jax.random.split(key, 12)

    def check(x, t, **kw):
        out = dice_loss(x, t, **kw)
        jax.block_until_ready(out)
        ref = dice_loss_ref(x, t)
        assert jnp.allclose(out, ref, atol=1e-4, rtol=1e-5), (out, ref)

    # 1) Base case (N=2, C=4, H=W=16, NCHW): D = 1024 = 8*128 -> lane-major
    #    path, single full block.
    x1 = jax.random.uniform(ks[0], (2, 4, 16, 16), dtype=jnp.float32)
    t1 = (jax.random.uniform(ks[1], (2, 4, 16, 16)) > 0.5).astype(jnp.float32)
    check(x1, t1)

    # 2) D = 1728 (not a multiple of 128): flat path, single full-extent
    #    block, no host-side pad.
    x2 = jax.random.uniform(ks[2], (2, 3, 24, 24), dtype=jnp.float32)
    t2 = (jax.random.uniform(ks[3], (2, 3, 24, 24)) > 0.5).astype(jnp.float32)
    check(x2, t2)

    # 3) Lane-major multi-block with an ODD block count (nb=5): exercises the
    #    always-on 2-way split, the clamped overflow iteration and the
    #    row-masked partial tail block.
    x3 = jax.random.uniform(ks[4], (2, 8, 64, 64), dtype=jnp.float32)
    t3 = (jax.random.uniform(ks[5], (2, 8, 64, 64)) > 0.5).astype(jnp.float32)
    check(x3, t3, block_bytes=56 * 1024)

    # 4) Flat path with small blocks (nb=7): lane-tail mask + overflow step.
    check(x2, t2, block_bytes=8 * 1024)

    # 5) bf16 predictions stream unconverted (half the HBM bytes); f32
    #    accumulation happens on the VPU inside the kernel.
    x5 = jax.random.uniform(ks[6], (2, 4, 16, 16), dtype=jnp.float32
                            ).astype(jnp.bfloat16)
    t5 = (jax.random.uniform(ks[7], (2, 4, 16, 16)) > 0.5).astype(jnp.float32)
    check(x5, t5)

    # 6) Tiny D = 128 (single (N,1,128) block, ungrouped accumulator path).
    x6 = jax.random.uniform(ks[8], (2, 2, 8, 8), dtype=jnp.float32)
    t6 = (jax.random.uniform(ks[9], (2, 2, 8, 8)) > 0.5).astype(jnp.float32)
    check(x6, t6)

    # TODO(synk): bool targets are accepted and widened in-kernel, but not
    # exercised here; typical segmentation targets arrive as float masks.
    print("KERNEL_OK")
</pallas_src>

<mosaic_0001>
module attributes {stable_mosaic.version = 11 : i64} {
  func.func @_dice_kernel_lanes(%arg0: i32, %arg1: i32, %arg2: memref<2x8x128xf32, #tpu.memory_space<vmem>>, %arg3: memref<2x8x128xf32, #tpu.memory_space<vmem>>, %arg4: memref<1x2x8x128xf32, #tpu.memory_space<vmem>>, %arg5: memref<1x2x8x128xf32, #tpu.memory_space<vmem>>) attributes {dimension_semantics = [#tpu.dimension_semantics<parallel>, #tpu.dimension_semantics<arbitrary>], iteration_bounds = array<i64: 1, 1>, scalar_prefetch = 0 : i64, scratch_operands = 0 : i64, tpu.core_type = #tpu.core_type<tc>, window_params = [{transform_indices = @transform_0, window_bounds = array<i64: 2, 8, 128>}, {transform_indices = @transform_1, window_bounds = array<i64: 2, 8, 128>}, {transform_indices = @transform_2, window_bounds = array<i64: 1, 2, 8, 128>}, {transform_indices = @transform_3, window_bounds = array<i64: 1, 2, 8, 128>}]} {
    %c0_i32 = arith.constant 0 : i32
    %0 = arith.cmpi eq, %arg1, %c0_i32 : i32
    %1 = arith.extui %0 : i1 to i32
    %c0_i32_0 = arith.constant 0 : i32
    %2 = arith.cmpi ne, %1, %c0_i32_0 : i32
    scf.if %2 {
      %cst = arith.constant 0.000000e+00 : f32
      %13 = vector.broadcast %cst : f32 to vector<2x8x128xf32>
      %c0 = arith.constant 0 : index
      %c0_6 = arith.constant 0 : index
      %c0_7 = arith.constant 0 : index
      %c0_8 = arith.constant 0 : index
      %14 = vector.load %arg4[%c0, %c0_6, %c0_7, %c0_8] : memref<1x2x8x128xf32, #tpu.memory_space<vmem>>, vector<1x2x8x128xf32>
      %15 = vector.shape_cast %14 : vector<1x2x8x128xf32> to vector<2x8x128xf32>
      %16 = vector.shape_cast %13 : vector<2x8x128xf32> to vector<1x2x8x128xf32>
      tpu.vector_store %arg4[%c0, %c0_6, %c0_7, %c0_8], %16 {strides = array<i32>} : memref<1x2x8x128xf32, #tpu.memory_space<vmem>>, vector<1x2x8x128xf32>,
      %cst_9 = arith.constant 0.000000e+00 : f32
      %17 = vector.broadcast %cst_9 : f32 to vector<2x8x128xf32>
      %c0_10 = arith.constant 0 : index
      %c0_11 = arith.constant 0 : index
      %c0_12 = arith.constant 0 : index
      %c0_13 = arith.constant 0 : index
      %18 = vector.load %arg5[%c0_10, %c0_11, %c0_12, %c0_13] : memref<1x2x8x128xf32, #tpu.memory_space<vmem>>, vector<1x2x8x128xf32>
      %19 = vector.shape_cast %18 : vector<1x2x8x128xf32> to vector<2x8x128xf32>
      %20 = vector.shape_cast %17 : vector<2x8x128xf32> to vector<1x2x8x128xf32>
      tpu.vector_store %arg5[%c0_10, %c0_11, %c0_12, %c0_13], %20 {strides = array<i32>} : memref<1x2x8x128xf32, #tpu.memory_space<vmem>>, vector<1x2x8x128xf32>,
    } else {
    }
    %c1_i32 = arith.constant 1 : i32
    %3 = arith.muli %arg0, %c1_i32 : i32
    %4 = arith.addi %3, %arg1 : i32
    %c8_i32 = arith.constant 8 : i32
    %5 = arith.muli %4, %c8_i32 : i32
    %c8_i32_1 = arith.constant 8 : i32
    %6 = arith.subi %c8_i32_1, %5 : i32
    %c8_i32_2 = arith.constant 8 : i32
    %7 = arith.cmpi sge, %6, %c8_i32_2 : i32
    %8 = arith.extui %7 : i1 to i32
    %c0_i32_3 = arith.constant 0 : i32
    %9 = arith.cmpi ne, %8, %c0_i32_3 : i32
    scf.if %9 {
      %c0 = arith.constant 0 : index
      %c0_6 = arith.constant 0 : index
      %c0_7 = arith.constant 0 : index
      %13 = vector.load %arg2[%c0, %c0_6, %c0_7] : memref<2x8x128xf32, #tpu.memory_space<vmem>>, vector<2x8x128xf32>
      %c0_8 = arith.constant 0 : index
      %c0_9 = arith.constant 0 : index
      %c0_10 = arith.constant 0 : index
      %14 = vector.load %arg3[%c0_8, %c0_9, %c0_10] : memref<2x8x128xf32, #tpu.memory_space<vmem>>, vector<2x8x128xf32>
      %15 = vector.shape_cast %13 : vector<2x8x128xf32> to vector<2x1x8x128xf32>
      %16 = vector.shape_cast %14 : vector<2x8x128xf32> to vector<2x1x8x128xf32>
      %c0_11 = arith.constant 0 : index
      %c0_12 = arith.constant 0 : index
      %c0_13 = arith.constant 0 : index
      %c0_14 = arith.constant 0 : index
      %17 = vector.load %arg4[%c0_11, %c0_12, %c0_13, %c0_14] : memref<1x2x8x128xf32, #tpu.memory_space<vmem>>, vector<1x2x8x128xf32>
      %18 = vector.shape_cast %17 : vector<1x2x8x128xf32> to vector<2x8x128xf32>
      %19 = arith.mulf %15, %16 : vector<2x1x8x128xf32>
      %cst = arith.constant dense<0.000000e+00> : vector<2x8x128xf32>
      %20 = vector.multi_reduction <add>, %19, %cst [1] : vector<2x1x8x128xf32> to vector<2x8x128xf32>
      %21 = arith.addf %18, %20 : vector<2x8x128xf32>
      %c0_15 = arith.constant 0 : index
      %c0_16 = arith.constant 0 : index
      %c0_17 = arith.constant 0 : index
      %c0_18 = arith.constant 0 : index
      %22 = vector.load %arg4[%c0_15, %c0_16, %c0_17, %c0_18] : memref<1x2x8x128xf32, #tpu.memory_space<vmem>>, vector<1x2x8x128xf32>
      %23 = vector.shape_cast %22 : vector<1x2x8x128xf32> to vector<2x8x128xf32>
      %24 = vector.shape_cast %21 : vector<2x8x128xf32> to vector<1x2x8x128xf32>
      tpu.vector_store %arg4[%c0_15, %c0_16, %c0_17, %c0_18], %24 {strides = array<i32>} : memref<1x2x8x128xf32, #tpu.memory_space<vmem>>, vector<1x2x8x128xf32>,
      %c0_19 = arith.constant 0 : index
      %c0_20 = arith.constant 0 : index
      %c0_21 = arith.constant 0 : index
      %c0_22 = arith.constant 0 : index
      %25 = vector.load %arg5[%c0_19, %c0_20, %c0_21, %c0_22] : memref<1x2x8x128xf32, #tpu.memory_space<vmem>>, vector<1x2x8x128xf32>
      %26 = vector.shape_cast %25 : vector<1x2x8x128xf32> to vector<2x8x128xf32>
      %27 = arith.addf %15, %16 : vector<2x1x8x128xf32>
      %cst_23 = arith.constant dense<0.000000e+00> : vector<2x8x128xf32>
      %28 = vector.multi_reduction <add>, %27, %cst_23 [1] : vector<2x1x8x128xf32> to vector<2x8x128xf32>
      %29 = arith.addf %26, %28 : vector<2x8x128xf32>
      %c0_24 = arith.constant 0 : index
      %c0_25 = arith.constant 0 : index
      %c0_26 = arith.constant 0 : index
      %c0_27 = arith.constant 0 : index
      %30 = vector.load %arg5[%c0_24, %c0_25, %c0_26, %c0_27] : memref<1x2x8x128xf32, #tpu.memory_space<vmem>>, vector<1x2x8x128xf32>
      %31 = vector.shape_cast %30 : vector<1x2x8x128xf32> to vector<2x8x128xf32>
      %32 = vector.shape_cast %29 : vector<2x8x128xf32> to vector<1x2x8x128xf32>
      tpu.vector_store %arg5[%c0_24, %c0_25, %c0_26, %c0_27], %32 {strides = array<i32>} : memref<1x2x8x128xf32, #tpu.memory_space<vmem>>, vector<1x2x8x128xf32>,
    } else {
    }
    %c8_i32_4 = arith.constant 8 : i32
    %10 = arith.cmpi slt, %6, %c8_i32_4 : i32
    %11 = arith.extui %10 : i1 to i32
    %c0_i32_5 = arith.constant 0 : i32
    %12 = arith.cmpi ne, %11, %c0_i32_5 : i32
    scf.if %12 {
      %13 = tpu.iota {dimensions = array<i32: 1>} : vector<2x8x128xi32>
      %14 = vector.broadcast %6 : i32 to vector<2x8x128xi32>
      %15 = arith.cmpi slt, %13, %14 : vector<2x8x128xi32>
      %c0 = arith.constant 0 : index
      %c0_6 = arith.constant 0 : index
      %c0_7 = arith.constant 0 : index
      %16 = vector.load %arg2[%c0, %c0_6, %c0_7] : memref<2x8x128xf32, #tpu.memory_space<vmem>>, vector<2x8x128xf32>
      %cst = arith.constant 0.000000e+00 : f32
      %17 = vector.broadcast %cst : f32 to vector<2x8x128xf32>
      %18 = arith.select %15, %16, %17 : vector<2x8x128xi1>, vector<2x8x128xf32>
      %c0_8 = arith.constant 0 : index
      %c0_9 = arith.constant 0 : index
      %c0_10 = arith.constant 0 : index
      %19 = vector.load %arg3[%c0_8, %c0_9, %c0_10] : memref<2x8x128xf32, #tpu.memory_space<vmem>>, vector<2x8x128xf32>
      %cst_11 = arith.constant 0.000000e+00 : f32
      %20 = vector.broadcast %cst_11 : f32 to vector<2x8x128xf32>
      %21 = arith.select %15, %19, %20 : vector<2x8x128xi1>, vector<2x8x128xf32>
      %22 = vector.shape_cast %18 : vector<2x8x128xf32> to vector<2x1x8x128xf32>
      %23 = vector.shape_cast %21 : vector<2x8x128xf32> to vector<2x1x8x128xf32>
      %c0_12 = arith.constant 0 : index
      %c0_13 = arith.constant 0 : index
      %c0_14 = arith.constant 0 : index
      %c0_15 = arith.constant 0 : index
      %24 = vector.load %arg4[%c0_12, %c0_13, %c0_14, %c0_15] : memref<1x2x8x128xf32, #tpu.memory_space<vmem>>, vector<1x2x8x128xf32>
      %25 = vector.shape_cast %24 : vector<1x2x8x128xf32> to vector<2x8x128xf32>
      %26 = arith.mulf %22, %23 : vector<2x1x8x128xf32>
      %cst_16 = arith.constant dense<0.000000e+00> : vector<2x8x128xf32>
      %27 = vector.multi_reduction <add>, %26, %cst_16 [1] : vector<2x1x8x128xf32> to vector<2x8x128xf32>
      %28 = arith.addf %25, %27 : vector<2x8x128xf32>
      %c0_17 = arith.constant 0 : index
      %c0_18 = arith.constant 0 : index
      %c0_19 = arith.constant 0 : index
      %c0_20 = arith.constant 0 : index
      %29 = vector.load %arg4[%c0_17, %c0_18, %c0_19, %c0_20] : memref<1x2x8x128xf32, #tpu.memory_space<vmem>>, vector<1x2x8x128xf32>
      %30 = vector.shape_cast %29 : vector<1x2x8x128xf32> to vector<2x8x128xf32>
      %31 = vector.shape_cast %28 : vector<2x8x128xf32> to vector<1x2x8x128xf32>
      tpu.vector_store %arg4[%c0_17, %c0_18, %c0_19, %c0_20], %31 {strides = array<i32>} : memref<1x2x8x128xf32, #tpu.memory_space<vmem>>, vector<1x2x8x128xf32>,
      %c0_21 = arith.constant 0 : index
      %c0_22 = arith.constant 0 : index
      %c0_23 = arith.constant 0 : index
      %c0_24 = arith.constant 0 : index
      %32 = vector.load %arg5[%c0_21, %c0_22, %c0_23, %c0_24] : memref<1x2x8x128xf32, #tpu.memory_space<vmem>>, vector<1x2x8x128xf32>
      %33 = vector.shape_cast %32 : vector<1x2x8x128xf32> to vector<2x8x128xf32>
      %34 = arith.addf %22, %23 : vector<2x1x8x128xf32>
      %cst_25 = arith.constant dense<0.000000e+00> : vector<2x8x128xf32>
      %35 = vector.multi_reduction <add>, %34, %cst_25 [1] : vector<2x1x8x128xf32> to vector<2x8x128xf32>
      %36 = arith.addf %33, %35 : vector<2x8x128xf32>
      %c0_26 = arith.constant 0 : index
      %c0_27 = arith.constant 0 : index
      %c0_28 = arith.constant 0 : index
      %c0_29 = arith.constant 0 : index
      %37 = vector.load %arg5[%c0_26, %c0_27, %c0_28, %c0_29] : memref<1x2x8x128xf32, #tpu.memory_space<vmem>>, vector<1x2x8x128xf32>
      %38 = vector.shape_cast %37 : vector<1x2x8x128xf32> to vector<2x8x128xf32>
      %39 = vector.shape_cast %36 : vector<2x8x128xf32> to vector<1x2x8x128xf32>
      tpu.vector_store %arg5[%c0_26, %c0_27, %c0_28, %c0_29], %39 {strides = array<i32>} : memref<1x2x8x128xf32, #tpu.memory_space<vmem>>, vector<1x2x8x128xf32>,
    } else {
    }
    return
  }
  func.func @transform_0(%arg0: i32, %arg1: i32) -> (i32, i32, i32) {
    %c1_i32 = arith.constant 1 : i32
    %0 = arith.muli %arg0, %c1_i32 : i32
    %1 = arith.addi %0, %arg1 : i32
    %c0_i32 = arith.constant 0 : i32
    %2 = arith.minsi %1, %c0_i32 : i32
    %c0_i32_0 = arith.constant 0 : i32
    %c0_i32_1 = arith.constant 0 : i32
    %c0_i32_2 = arith.constant 0 : i32
    return %c0_i32_0, %2, %c0_i32_1 : i32, i32, i32
  }
  func.func @transform_1(%arg0: i32, %arg1: i32) -> (i32, i32, i32) {
    %c1_i32 = arith.constant 1 : i32
    %0 = arith.muli %arg0, %c1_i32 : i32
    %1 = arith.addi %0, %arg1 : i32
    %c0_i32 = arith.constant 0 : i32
    %2 = arith.minsi %1, %c0_i32 : i32
    %c0_i32_0 = arith.constant 0 : i32
    %c0_i32_1 = arith.constant 0 : i32
    %c0_i32_2 = arith.constant 0 : i32
    return %c0_i32_0, %2, %c0_i32_1 : i32, i32, i32
  }
  func.func @transform_2(%arg0: i32, %arg1: i32) -> (i32, i32, i32, i32) {
    %c0_i32 = arith.constant 0 : i32
    %c0_i32_0 = arith.constant 0 : i32
    %c0_i32_1 = arith.constant 0 : i32
    %c0_i32_2 = arith.constant 0 : i32
    return %arg0, %c0_i32, %c0_i32_0, %c0_i32_1 : i32, i32, i32, i32
  }
  func.func @transform_3(%arg0: i32, %arg1: i32) -> (i32, i32, i32, i32) {
    %c0_i32 = arith.constant 0 : i32
    %c0_i32_0 = arith.constant 0 : i32
    %c0_i32_1 = arith.constant 0 : i32
    %c0_i32_2 = arith.constant 0 : i32
    return %arg0, %c0_i32, %c0_i32_0, %c0_i32_1 : i32, i32, i32, i32
  }
}

</mosaic_0001>

<bundles_post_ra>
// kernel: _dice_loss_impl.1
= control target key start
LH: loop header
LB: loop body
LE: loop exit
PB: predicated region body
PF: predicated region fallthrough
CT: control target
= control target key end

     0   :  { %s207_s0 = inlined_call_operand.vmem [shape: f32[2,8,128], index: 0, kind: input, shape index: {}]   ;;  %s208_s1 = inlined_call_operand.vmem [shape: f32[2,8,128], index: 1, kind: input, shape index: {}]   ;;  %s209_s2 = inlined_call_operand.vmem [shape: f32[1,2,8,128], index: 2, kind: output, shape index: {0}]   ;;  %s210_s3 = inlined_call_operand.vmem [shape: f32[1,2,8,128], index: 3, kind: output, shape index: {1}]  }
   0x1   :  { %v82_v0 = vld [vmem:[%s207_s0] sm:$0xff]  ;;  %v83_v2 = vld [vmem:[%s207_s0 + $0x8] sm:$0xff] }
   0x2   :  { %v84_v1 = vld [vmem:[%s208_s1] sm:$0xff]  ;;  %v85_v4 = vld [vmem:[%s208_s1 + $0x8] sm:$0xff] }
   0x3   :  { %v88_v3 = vmul.f32 %v84_v1, %v82_v0  ;;  %v98_v5 = vadd.f32 %v84_v1, %v82_v0  ;;  %v89_v6 = vmul.f32 %v85_v4, %v83_v2  ;;  %v99_v7 = vadd.f32 %v85_v4, %v83_v2 }
   0x5   :  { %94 = vst [vmem:[%s209_s2] sm:$0xff] %v88_v3  ;;  %104 = vst [vmem:[%s210_s3] sm:$0xff] %v98_v5 }
   0x6   :  { %95 = vst [vmem:[%s209_s2 + $0x8] sm:$0xff] %v89_v6  ;;  %105 = vst [vmem:[%s210_s3 + $0x8] sm:$0xff] %v99_v7 }

</bundles_post_ra>
